<compile_context>
chip_gen: v6e
topology: v6e:2x2x1
jax: 0.10.0
libtpu: 0.0.40
codegen_flags: <defaults>
</compile_context>

<pallas_src>
import functools
import math

import jax
import jax.numpy as jnp
from jax import lax
from jax.experimental import pallas as pl
from jax.experimental.pallas import tpu as pltpu


def feedforward_kernel(x_ref, ln_g_ref, ln_b_ref, w1_ref, b1_ref,
                       w2_ref, b2_ref, out_ref, ln_sc, acc_sc,
                       *, approximate_gelu=False):
    h_idx = pl.program_id(1)

    # ---- LayerNorm (f32 stats) + accumulator init: first hidden step only ----
    @pl.when(h_idx == 0)
    def _():
        x = x_ref[...].astype(jnp.float32)                       # (tm, D)
        mu = jnp.mean(x, axis=-1, keepdims=True)
        var = jnp.mean((x - mu) ** 2, axis=-1, keepdims=True)
        ln = (x - mu) * lax.rsqrt(var + 1e-5) * ln_g_ref[...] + ln_b_ref[...]
        ln_sc[...] = ln.astype(jnp.bfloat16)                     # bf16 MXU input
        acc_sc[...] = jnp.zeros_like(acc_sc)

    # ---- Linear 1 on this hidden tile (bf16 MXU, f32 accumulate) + GELU ----
    a = jnp.dot(ln_sc[...], w1_ref[...],
                preferred_element_type=jnp.float32) + b1_ref[...]
    if approximate_gelu:
        # Opt-in tanh GELU (EUP op; cheaper on v6e/v7x). Deviates slightly from
        # PyTorch's default exact-erf GELU, hence not the default.
        c = math.sqrt(2.0 / math.pi)
        a = 0.5 * a * (1.0 + jnp.tanh(c * (a + 0.044715 * (a * a * a))))
    else:
        a = 0.5 * a * (1.0 + lax.erf(a * (1.0 / math.sqrt(2.0))))

    # TODO(synk): Dropout (rate=0.0 default) is an identity at inference and is
    # omitted; stochastic training-time dropout is not implemented.

    # ---- Linear 2 partial product, accumulated over hidden-dim tiles ----
    acc_sc[...] += jnp.dot(a.astype(jnp.bfloat16), w2_ref[...],
                           preferred_element_type=jnp.float32)

    @pl.when(h_idx == pl.num_programs(1) - 1)
    def _():
        out_ref[...] = (acc_sc[...] + b2_ref[...]).astype(out_ref.dtype)


def _round_up(x, m):
    return ((x + m - 1) // m) * m


def feedforward_forward(x, params, *, block_rows=256, hidden_block=512,
                        approximate_gelu=False):
    """x: (..., D).  params = (ln_g, ln_b, w1, b1, w2, b2) with
    ln_g/ln_b/b2: (1, D) f32, b1: (1, H) f32, w1: (D, H), w2: (H, D).
    Pass w1/w2 already cast to bf16 (one-time, at parameter-load time)."""
    ln_g, ln_b, w1, b1, w2, b2 = params
    orig_shape = x.shape
    D = orig_shape[-1]
    H = w1.shape[1]

    # Fallback only -- callers should pre-cast weights once (keeps the per-call
    # f32->bf16 HBM round trip out of the hot path).
    if w1.dtype != jnp.bfloat16:
        w1 = w1.astype(jnp.bfloat16)
    if w2.dtype != jnp.bfloat16:
        w2 = w2.astype(jnp.bfloat16)

    # Lane-dense (rows, D) slab; no jnp.pad -- Pallas masks the partial last
    # row block (every op is row-local, OOB stores are discarded).
    x2 = x.reshape(-1, D)
    R = x2.shape[0]

    # Row tile: large (fills MXU M dim, amortizes grid-step overhead), but keep
    # >= 2 row blocks when possible so v7x megacore can split the parallel axis.
    if R <= 8:
        tm = R
    else:
        tm = min(block_rows, _round_up(R, 8))
        if pl.cdiv(R, tm) < 2:
            tm = max(8, _round_up(pl.cdiv(R, 2), 8))

    # Hidden tile: must evenly divide H (a partial hidden tile would feed
    # garbage into the Linear2 accumulation) and be lane-aligned.
    th = min(hidden_block, H)
    if H % th != 0 or (th % 128 != 0 and th != H):
        th = H

    n_row_blocks = pl.cdiv(R, tm)
    n_h_blocks = H // th

    grid_spec = pltpu.PrefetchScalarGridSpec(
        num_scalar_prefetch=0,
        grid=(n_row_blocks, n_h_blocks),          # reduction (h) axis last
        in_specs=[
            pl.BlockSpec((tm, D), lambda i, h: (i, 0)),    # x tile (reused across h)
            pl.BlockSpec((1, D), lambda i, h: (0, 0)),     # ln gamma
            pl.BlockSpec((1, D), lambda i, h: (0, 0)),     # ln beta
            pl.BlockSpec((D, th), lambda i, h: (0, h)),    # W1 hidden tile (bf16)
            pl.BlockSpec((1, th), lambda i, h: (0, h)),    # b1 hidden tile
            pl.BlockSpec((th, D), lambda i, h: (h, 0)),    # W2 hidden tile (bf16)
            pl.BlockSpec((1, D), lambda i, h: (0, 0)),     # b2
        ],
        out_specs=pl.BlockSpec((tm, D), lambda i, h: (i, 0)),
        scratch_shapes=[
            pltpu.VMEM((tm, D), jnp.bfloat16),             # LayerNorm output
            pltpu.VMEM((tm, D), jnp.float32),              # Linear2 accumulator
        ],
    )

    cost = pl.CostEstimate(
        flops=4 * R * D * H,                      # two matmuls
        transcendentals=R * H,                    # one erf/tanh per hidden act
        bytes_accessed=2 * R * D * 4 + 2 * D * H * 2 + (2 * D + H) * 4,
    )

    kernel = functools.partial(feedforward_kernel,
                               approximate_gelu=approximate_gelu)

    out = pl.pallas_call(
        kernel,
        out_shape=jax.ShapeDtypeStruct((R, D), jnp.float32),
        grid_spec=grid_spec,
        compiler_params=pltpu.CompilerParams(
            dimension_semantics=("parallel", "arbitrary"),
            vmem_limit_bytes=64 * 1024 * 1024),
        cost_estimate=cost,
    )(x2, ln_g, ln_b, w1, b1, w2, b2)

    return out.reshape(orig_shape)


def reference_forward(x, params):
    """Pure-JAX f32 reference mirroring the PyTorch forward (for validation)."""
    ln_g, ln_b, w1, b1, w2, b2 = params
    mu = x.mean(-1, keepdims=True)
    var = ((x - mu) ** 2).mean(-1, keepdims=True)
    h = (x - mu) / jnp.sqrt(var + 1e-5) * ln_g + ln_b
    a = jax.nn.gelu(h @ w1 + b1, approximate=False)
    return a @ w2 + b2


if __name__ == "__main__":
    # Small shapes consistent with the module; D/H chosen lane-dense.
    B, N, D, H = 2, 8, 128, 256

    key = jax.random.PRNGKey(0)
    k_x, k_w1, k_b1, k_w2, k_g, k_b = jax.random.split(key, 6)

    x = jax.random.normal(k_x, (B, N, D), jnp.float32)

    ln_g = 1.0 + 0.1 * jax.random.normal(k_g, (1, D), jnp.float32)
    ln_b = 0.1 * jax.random.normal(k_b, (1, D), jnp.float32)
    w1 = 0.05 * jax.random.normal(k_w1, (D, H), jnp.float32)   # (in, out)
    b1 = 0.01 * jax.random.normal(k_b1, (1, H), jnp.float32)
    w2 = 0.05 * jax.random.normal(k_w2, (H, D), jnp.float32)   # (in, out)
    b2 = jnp.zeros((1, D), jnp.float32)

    # One-time bf16 weight cast at parameter-load time (not in the hot path).
    params = (ln_g, ln_b, w1.astype(jnp.bfloat16), b1,
              w2.astype(jnp.bfloat16), b2)

    # hidden_block=128 exercises the H-tiled accumulation; the row-tile logic
    # yields 2 row blocks -> grid = (2, 2), semantics ("parallel", "arbitrary").
    out = feedforward_forward(x, params, block_rows=256, hidden_block=128)
    out = jax.block_until_ready(out)

    ref = reference_forward(x, (ln_g, ln_b, w1, b1, w2, b2))
    assert out.shape == (B, N, D)
    # bf16 MXU inputs (f32 accumulation) -> loosened tolerance vs pure-f32 ref.
    max_err = float(jnp.max(jnp.abs(out - ref)))
    assert jnp.allclose(out, ref, rtol=3e-2, atol=3e-2), max_err

    print("KERNEL_OK")
</pallas_src>

<mosaic_0001>
module attributes {stable_mosaic.version = 11 : i64} {
  func.func @feedforward_kernel(%arg0: i32, %arg1: i32, %arg2: memref<8x128xf32, #tpu.memory_space<vmem>>, %arg3: memref<1x128xf32, #tpu.memory_space<vmem>>, %arg4: memref<1x128xf32, #tpu.memory_space<vmem>>, %arg5: memref<128x128xbf16, #tpu.memory_space<vmem>>, %arg6: memref<1x128xf32, #tpu.memory_space<vmem>>, %arg7: memref<128x128xbf16, #tpu.memory_space<vmem>>, %arg8: memref<1x128xf32, #tpu.memory_space<vmem>>, %arg9: memref<8x128xf32, #tpu.memory_space<vmem>>, %arg10: memref<8x128xbf16, #tpu.memory_space<vmem>>, %arg11: memref<8x128xf32, #tpu.memory_space<vmem>>) attributes {dimension_semantics = [#tpu.dimension_semantics<parallel>, #tpu.dimension_semantics<arbitrary>], iteration_bounds = array<i64: 2, 2>, scalar_prefetch = 0 : i64, scratch_operands = 2 : i64, tpu.core_type = #tpu.core_type<tc>, window_params = [{transform_indices = @transform_0, window_bounds = array<i64: 8, 128>}, {pipeline_mode = #tpu.pipeline_mode<synchronous>, transform_indices = @transform_1, window_bounds = array<i64: 1, 128>}, {pipeline_mode = #tpu.pipeline_mode<synchronous>, transform_indices = @transform_2, window_bounds = array<i64: 1, 128>}, {transform_indices = @transform_3, window_bounds = array<i64: 128, 128>}, {transform_indices = @transform_4, window_bounds = array<i64: 1, 128>}, {transform_indices = @transform_5, window_bounds = array<i64: 128, 128>}, {pipeline_mode = #tpu.pipeline_mode<synchronous>, transform_indices = @transform_6, window_bounds = array<i64: 1, 128>}, {transform_indices = @transform_7, window_bounds = array<i64: 8, 128>}]} {
    %c0_i32 = arith.constant 0 : i32
    %0 = arith.cmpi eq, %arg1, %c0_i32 : i32
    %1 = arith.extui %0 : i1 to i32
    %c0_i32_0 = arith.constant 0 : i32
    %2 = arith.cmpi ne, %1, %c0_i32_0 : i32
    scf.if %2 {
      %c0_17 = arith.constant 0 : index
      %c0_18 = arith.constant 0 : index
      %26 = vector.load %arg2[%c0_17, %c0_18] : memref<8x128xf32, #tpu.memory_space<vmem>>, vector<8x128xf32>
      %cst_19 = arith.constant dense<0.000000e+00> : vector<8xf32>
      %27 = vector.multi_reduction <add>, %26, %cst_19 [1] : vector<8x128xf32> to vector<8xf32>
      %28 = vector.shape_cast %27 : vector<8xf32> to vector<8x1xf32>
      %cst_20 = arith.constant 1.280000e+02 : f32
      %29 = vector.broadcast %cst_20 : f32 to vector<8x1xf32>
      %30 = arith.divf %28, %29 : vector<8x1xf32>
      %31 = vector.broadcast %30 : vector<8x1xf32> to vector<8x128xf32>
      %32 = arith.subf %26, %31 : vector<8x128xf32>
      %33 = arith.mulf %32, %32 : vector<8x128xf32>
      %cst_21 = arith.constant dense<0.000000e+00> : vector<8xf32>
      %34 = vector.multi_reduction <add>, %33, %cst_21 [1] : vector<8x128xf32> to vector<8xf32>
      %35 = vector.shape_cast %34 : vector<8xf32> to vector<8x1xf32>
      %cst_22 = arith.constant 1.280000e+02 : f32
      %36 = vector.broadcast %cst_22 : f32 to vector<8x1xf32>
      %37 = arith.divf %35, %36 : vector<8x1xf32>
      %38 = vector.broadcast %30 : vector<8x1xf32> to vector<8x128xf32>
      %39 = arith.subf %26, %38 : vector<8x128xf32>
      %cst_23 = arith.constant 9.99999974E-6 : f32
      %40 = vector.broadcast %cst_23 : f32 to vector<8x1xf32>
      %41 = arith.addf %37, %40 : vector<8x1xf32>
      %42 = math.rsqrt %41 : vector<8x1xf32>
      %43 = vector.broadcast %42 : vector<8x1xf32> to vector<8x128xf32>
      %44 = arith.mulf %39, %43 : vector<8x128xf32>
      %c0_24 = arith.constant 0 : index
      %c0_25 = arith.constant 0 : index
      %45 = vector.load %arg3[%c0_24, %c0_25] : memref<1x128xf32, #tpu.memory_space<vmem>>, vector<1x128xf32>
      %46 = vector.broadcast %45 : vector<1x128xf32> to vector<8x128xf32>
      %47 = arith.mulf %44, %46 : vector<8x128xf32>
      %c0_26 = arith.constant 0 : index
      %c0_27 = arith.constant 0 : index
      %48 = vector.load %arg4[%c0_26, %c0_27] : memref<1x128xf32, #tpu.memory_space<vmem>>, vector<1x128xf32>
      %49 = vector.broadcast %48 : vector<1x128xf32> to vector<8x128xf32>
      %50 = arith.addf %47, %49 : vector<8x128xf32>
      %51 = arith.truncf %50 : vector<8x128xf32> to vector<8x128xbf16>
      %c0_28 = arith.constant 0 : index
      %c0_29 = arith.constant 0 : index
      %52 = vector.load %arg10[%c0_28, %c0_29] : memref<8x128xbf16, #tpu.memory_space<vmem>>, vector<8x128xbf16>
      tpu.vector_store %arg10[%c0_28, %c0_29], %51 {strides = array<i32>} : memref<8x128xbf16, #tpu.memory_space<vmem>>, vector<8x128xbf16>,
      %cst_30 = arith.constant 0.000000e+00 : f32
      %53 = vector.broadcast %cst_30 : f32 to vector<8x128xf32>
      %c0_31 = arith.constant 0 : index
      %c0_32 = arith.constant 0 : index
      %54 = vector.load %arg11[%c0_31, %c0_32] : memref<8x128xf32, #tpu.memory_space<vmem>>, vector<8x128xf32>
      tpu.vector_store %arg11[%c0_31, %c0_32], %53 {strides = array<i32>} : memref<8x128xf32, #tpu.memory_space<vmem>>, vector<8x128xf32>,
    } else {
    }
    %c0 = arith.constant 0 : index
    %c0_1 = arith.constant 0 : index
    %3 = vector.load %arg10[%c0, %c0_1] : memref<8x128xbf16, #tpu.memory_space<vmem>>, vector<8x128xbf16>
    %c0_2 = arith.constant 0 : index
    %c0_3 = arith.constant 0 : index
    %4 = vector.load %arg5[%c0_2, %c0_3] : memref<128x128xbf16, #tpu.memory_space<vmem>>, vector<128x128xbf16>
    %cst = arith.constant dense<0.000000e+00> : vector<8x128xf32>
    %5 = tpu.matmul %3, %4, %cst {dimension_numbers = #tpu.dot_dimension_numbers<[1], [0], [0], [1], [0, 0, 1, 1], [], []>} : vector<8x128xbf16>, vector<128x128xbf16>, vector<8x128xf32> -> vector<8x128xf32>
    %c0_4 = arith.constant 0 : index
    %c0_5 = arith.constant 0 : index
    %6 = vector.load %arg6[%c0_4, %c0_5] : memref<1x128xf32, #tpu.memory_space<vmem>>, vector<1x128xf32>
    %7 = vector.broadcast %6 : vector<1x128xf32> to vector<8x128xf32>
    %8 = arith.addf %5, %7 : vector<8x128xf32>
    %cst_6 = arith.constant 5.000000e-01 : f32
    %9 = vector.broadcast %cst_6 : f32 to vector<8x128xf32>
    %10 = arith.mulf %9, %8 : vector<8x128xf32>
    %cst_7 = arith.constant 0.707106769 : f32
    %11 = vector.broadcast %cst_7 : f32 to vector<8x128xf32>
    %12 = arith.mulf %8, %11 : vector<8x128xf32>
    %13 = math.erf %12 : vector<8x128xf32>
    %cst_8 = arith.constant 1.000000e+00 : f32
    %14 = vector.broadcast %cst_8 : f32 to vector<8x128xf32>
    %15 = arith.addf %14, %13 : vector<8x128xf32>
    %16 = arith.mulf %10, %15 : vector<8x128xf32>
    %c0_9 = arith.constant 0 : index
    %c0_10 = arith.constant 0 : index
    %17 = vector.load %arg11[%c0_9, %c0_10] : memref<8x128xf32, #tpu.memory_space<vmem>>, vector<8x128xf32>
    %18 = arith.truncf %16 : vector<8x128xf32> to vector<8x128xbf16>
    %c0_11 = arith.constant 0 : index
    %c0_12 = arith.constant 0 : index
    %19 = vector.load %arg7[%c0_11, %c0_12] : memref<128x128xbf16, #tpu.memory_space<vmem>>, vector<128x128xbf16>
    %cst_13 = arith.constant dense<0.000000e+00> : vector<8x128xf32>
    %20 = tpu.matmul %18, %19, %cst_13 {dimension_numbers = #tpu.dot_dimension_numbers<[1], [0], [0], [1], [0, 0, 1, 1], [], []>} : vector<8x128xbf16>, vector<128x128xbf16>, vector<8x128xf32> -> vector<8x128xf32>
    %21 = arith.addf %17, %20 : vector<8x128xf32>
    %c0_14 = arith.constant 0 : index
    %c0_15 = arith.constant 0 : index
    %22 = vector.load %arg11[%c0_14, %c0_15] : memref<8x128xf32, #tpu.memory_space<vmem>>, vector<8x128xf32>
    tpu.vector_store %arg11[%c0_14, %c0_15], %21 {strides = array<i32>} : memref<8x128xf32, #tpu.memory_space<vmem>>, vector<8x128xf32>,
    %c1_i32 = arith.constant 1 : i32
    %23 = arith.cmpi eq, %arg1, %c1_i32 : i32
    %24 = arith.extui %23 : i1 to i32
    %c0_i32_16 = arith.constant 0 : i32
    %25 = arith.cmpi ne, %24, %c0_i32_16 : i32
    scf.if %25 {
      %c0_17 = arith.constant 0 : index
      %c0_18 = arith.constant 0 : index
      %26 = vector.load %arg11[%c0_17, %c0_18] : memref<8x128xf32, #tpu.memory_space<vmem>>, vector<8x128xf32>
      %c0_19 = arith.constant 0 : index
      %c0_20 = arith.constant 0 : index
      %27 = vector.load %arg8[%c0_19, %c0_20] : memref<1x128xf32, #tpu.memory_space<vmem>>, vector<1x128xf32>
      %28 = vector.broadcast %27 : vector<1x128xf32> to vector<8x128xf32>
      %29 = arith.addf %26, %28 : vector<8x128xf32>
      %c0_21 = arith.constant 0 : index
      %c0_22 = arith.constant 0 : index
      %30 = vector.load %arg9[%c0_21, %c0_22] : memref<8x128xf32, #tpu.memory_space<vmem>>, vector<8x128xf32>
      tpu.vector_store %arg9[%c0_21, %c0_22], %29 {strides = array<i32>} : memref<8x128xf32, #tpu.memory_space<vmem>>, vector<8x128xf32>,
    } else {
    }
    return
  }
  func.func @transform_0(%arg0: i32, %arg1: i32) -> (i32, i32) {
    %c0_i32 = arith.constant 0 : i32
    %c0_i32_0 = arith.constant 0 : i32
    return %arg0, %c0_i32 : i32, i32
  }
  func.func @transform_1(%arg0: i32, %arg1: i32) -> (i32, i32) {
    %c0_i32 = arith.constant 0 : i32
    %c0_i32_0 = arith.constant 0 : i32
    %c0_i32_1 = arith.constant 0 : i32
    return %c0_i32, %c0_i32_0 : i32, i32
  }
  func.func @transform_2(%arg0: i32, %arg1: i32) -> (i32, i32) {
    %c0_i32 = arith.constant 0 : i32
    %c0_i32_0 = arith.constant 0 : i32
    %c0_i32_1 = arith.constant 0 : i32
    return %c0_i32, %c0_i32_0 : i32, i32
  }
  func.func @transform_3(%arg0: i32, %arg1: i32) -> (i32, i32) {
    %c0_i32 = arith.constant 0 : i32
    %c0_i32_0 = arith.constant 0 : i32
    return %c0_i32, %arg1 : i32, i32
  }
  func.func @transform_4(%arg0: i32, %arg1: i32) -> (i32, i32) {
    %c0_i32 = arith.constant 0 : i32
    %c0_i32_0 = arith.constant 0 : i32
    return %c0_i32, %arg1 : i32, i32
  }
  func.func @transform_5(%arg0: i32, %arg1: i32) -> (i32, i32) {
    %c0_i32 = arith.constant 0 : i32
    %c0_i32_0 = arith.constant 0 : i32
    return %arg1, %c0_i32 : i32, i32
  }
  func.func @transform_6(%arg0: i32, %arg1: i32) -> (i32, i32) {
    %c0_i32 = arith.constant 0 : i32
    %c0_i32_0 = arith.constant 0 : i32
    %c0_i32_1 = arith.constant 0 : i32
    return %c0_i32, %c0_i32_0 : i32, i32
  }
  func.func @transform_7(%arg0: i32, %arg1: i32) -> (i32, i32) {
    %c0_i32 = arith.constant 0 : i32
    %c0_i32_0 = arith.constant 0 : i32
    return %arg0, %c0_i32 : i32, i32
  }
}

</mosaic_0001>

<bundles_post_ra>
// kernel: tpu_custom_call.1
= control target key start
LH: loop header
LB: loop body
LE: loop exit
PB: predicated region body
PF: predicated region fallthrough
CT: control target
= control target key end

     0   :  { %s1713_s0 = inlined_call_operand.hbm [shape: f32[16,128], index: 0, kind: input, shape index: {}]   ;;  %s1714_s1 = inlined_call_operand.vmem [shape: f32[1,128], index: 1, kind: input, shape index: {}]   ;;  %s1715_s2 = inlined_call_operand.hbm [shape: f32[1,128], index: 2, kind: input, shape index: {}]   ;;  %s1716_s3 = inlined_call_operand.hbm [shape: bf16[128,256], index: 3, kind: input, shape index: {}]   ;;  %s1717_s4 = inlined_call_operand.vmem [shape: f32[1,256], index: 4, kind: input, shape index: {}]   ;;  %s1718_s5 = inlined_call_operand.hbm [shape: bf16[256,128], index: 5, kind: input, shape index: {}]   ;;  %s1719_s6 = inlined_call_operand.vmem [shape: f32[1,128], index: 6, kind: input, shape index: {}]   ;;  %s1720_s7 = inlined_call_operand.hbm [shape: f32[16,128], index: 7, kind: output, shape index: {}]  }
   0x1   :  { %1731 = sst [smem:[#allocation23_spill]] %s1713_s0 }
   0x2   :  { %1732 = sst [smem:[#allocation24_spill]] %s1716_s3 }
   0x3   :  { %1733 = sst [smem:[#allocation25_spill]] %s1719_s6 }
   0x4   :  { %1734 = sst [smem:[#allocation26_spill]] %s1720_s7 }
   0x5   :  { %12 = vsyncpa [#allocation5], 0 }
   0x6   :  { %14 = vsyncpa [#allocation5 + $0x1], 0 }
   0x7   :  { %15 = vsyncpa [#allocation8], 0 }
   0x8   :  { %16 = vsyncpa [#allocation6], 0 }
   0x9   :  { %18 = vsyncpa [#allocation6 + $0x1], 0  ;;  %s1380_s24 = smov 0   ;;  %s1382_s25 = smov 0  }
   0xa   :  { %s1384_s26 = smov 0   ;;  %s1386_s27 = smov 0  }
   0xb   :  { %s1388_s28 = smov 0   ;;  %s1390_s29 = smov 0  }
   0xc   :  { %s1392_s30 = smov 0   ;;  %s1394_s8 = smov 0  }
   0xd   :  { %s1396_s9 = smov 0   ;;  %s1398_s10 = smov 0  }
   0xe   :  { %s1400_s11 = smov 0  }
   0xf LB: > { %1735 = sst [smem:[#allocation16_spill]] %s1315_s8  ;;  %s33_s12 = sadd.s32 1, %s1319_s9  ;;  %s1327_s11 = sphi %s1400_s11, %s24_s11   ;;  %s1323_s10 = sphi %s1398_s10, %s1768_s10   ;;  %s1319_s9 = sphi %s1396_s9, %s1767_s9   ;;  %s1315_s8 = sphi %s1394_s8, %s1766_s8   ;;  %s1311_s30 = sphi %s1392_s30, %s1765_s30   ;;  %s1307_s29 = sphi %s1390_s29, %s1774_s29   ;;  %s1303_s28 = sphi %s1388_s28, %s1773_s28   ;;  %s1299_s27 = sphi %s1386_s27, %s1772_s27   ;;  %s1295_s26 = sphi %s1384_s26, %s1771_s26   ;;  %s1291_s25 = sphi %s1382_s25, %s1770_s25   ;;  %s1287_s24 = sphi %s1380_s24, %s1769_s24  }
  0x10   : > { %1736 = sst [smem:[#allocation17_spill]] %s1319_s9  ;;  %s36_s13 = sadd.s32 1, %s1323_s10 }
  0x11   : > { %1737 = sst [smem:[#allocation18_spill]] %s1323_s10  ;;  %p34_p0 = scmp.ge.s32.totalorder %s33_s12, 2 }
  0x12   : > { %s43_s14 = sadd.s32 1, %s1307_s29  ;;  %p50_p1 = scmp.ne.s32.totalorder %s1307_s29, %s1303_s28 }
  0x13   : > { %p51_p2 = scmp.eq.s32.totalorder %s1327_s11, 0  ;;  %s1776_s12 = smov (%p34_p0, %s33_s12), 0 }
  0x14   : > { %1738 = sst [smem:[#allocation19_spill]] %s1776_s12  ;;  %s1778_s13 = smov (!%p34_p0, %s36_s13), %s1323_s10 }
  0x15   : > { %p1447_p3 = por %p51_p2, %p50_p1  ;;  %s108_s16 = ssub.s32 %s1319_s9, %s1776_s12 }
  0x16   : > { %p38_p4 = scmp.ge.s32.totalorder %s1778_s13, 2  ;;  %p109_p5 = scmp.eq.s32.totalorder %s108_s16, 0 }
  0x17   : > { %s111_s17 = sadd.s32 1, %s1295_s26  ;;  %p118_p6 = scmp.ne.s32.totalorder %s1295_s26, %s1291_s25 }
  0x18   : > { %s1780_s13 = smov (%p38_p4, %s1778_s13), 0  ;;  %p971_p9 = scmp.lt.s32.totalorder %s1327_s11, 4 }
  0x19   : > { %1740 = sst [smem:[#allocation20_spill]] %s1780_s13  ;;  %s40_s19 = ssub.s32 %s1323_s10, %s1780_s13 }
  0x1a   : > { %s1459_s18 = scalar_select %p109_p5, %s1295_s26, %s111_s17  }
  0x1b   : > { %p1463_p7 = por %p118_p6, %p51_p2  ;;  %p41_p8 = scmp.eq.s32.totalorder %s40_s19, 0 }
  0x1c   : > { %1741 = sst [smem:[#allocation21_spill]] %s1459_s18  ;;  %s264_s21 = sand.u32 1, %s1327_s11  }
  0x1d   : > { %s1470_s22 = scalar_select %p41_p8, %s1307_s29, %s43_s14  }
  0x1e   : > { %s266_s23 = sand.u32 1, %s1307_s29   ;;  %s843_s12 = sshll.u32 %s1323_s10, 7 }
  0x1f   : > { %1743 = sst [smem:[#allocation22_spill]] %s1470_s22  ;;  %s842_s16 = sshll.u32 %s266_s23, 3 }
  0x20   : > { %s1744_s0 = sld [smem:[#allocation23_spill]]  ;;  %s268_s18 = scalar_lea.vmem [#allocation4], %s842_s16 }
  0x21   : > { %s275_s6 = sshll.u32 %s268_s18, 4  ;;  %p1479_p10 = pnand %p971_p9, %p1447_p3  ;;  %s276_s6 = int_to_ptr.vmem [resolvable:$true] %s275_s6 }
  0x22   : > { %p1485_p11 = pnand %p971_p9, %p1463_p7  ;;  %s284_s19 = sand.u32 1, %s1295_s26  }
  0x23   : > { %s1490_s23 = scalar_lea.sflag [#allocation5], %s264_s21  ;;  %p1091_p12 = pneg %p1479_p10 }
  0x24   : > { %s1102_s7 = scalar_lea.vmem %s276_s6, 128  ;;  %s1329_s8 = smov [#allocation4]  }
  0x25   : > { %p1103_p13 = scmp.ne.s32.totalorder %s276_s6, %s1102_s7 }
  0x26   : > { %s273_s17 = scalar_lea.hbm %s1744_s0, %s843_s12  ;;  %s1107_s12 = sshll.u32 %s1329_s8, 4  ;;  %s1108_s12 = int_to_ptr.vmem [resolvable:$false] %s1107_s12 }
  0x27   : > { %p1105_p0 = pnand %p1103_p13, %p1091_p12  ;;  %s1109_s15 = scalar_lea.vmem %s1108_s12, 256 }
  0x28   : > { %p1110_p3 = scmp.lt.s32.totalorder %s276_s6, %s1108_s12  ;;  %p1111_p4 = scmp.lt.s32.totalorder %s1109_s15, %s1102_s7 }
  0x29   : > { %p1106_p2 = pneg %p1105_p0 }
  0x2a   : > { %p1112_p5 = por %p1111_p4, %p1110_p3 }
  0x2c   : > { %p1113_p6 = pnand %p1112_p5, %p1106_p2 }
  0x2e   : > { %1116 = shalt.err (!%p1113_p6)
}
  0x2f   : > { %959 = dma.hbm_to_vmem [thread:$0]  (!%p1479_p10), %s273_s17, 128, %s276_s6, %s1490_s23  }
  0x30   : > { %s1497_s18 = sshll.u32 %s284_s19, 6  ;;  %s845_s20 = sshll.u32 %s1319_s9, 6 }
  0x31   : > { %s1747_s3 = sld [smem:[#allocation24_spill]]  ;;  %s286_s12 = scalar_lea.vmem [#allocation9], %s1497_s18 }
  0x32   : > { %s292_s7 = sshll.u32 %s286_s12, 4  ;;  %p1724_p7 = pneg %p1485_p11  ;;  %s293_s7 = int_to_ptr.vmem [resolvable:$true] %s292_s7 }
  0x33   : > { %s1130_s15 = scalar_lea.vmem %s293_s7, 1024  ;;  %s1330_s6 = smov [#allocation9]  }
  0x34   : > { %p1131_p8 = scmp.ne.s32.totalorder %s293_s7, %s1130_s15  ;;  %s1135_s13 = sshll.u32 %s1330_s6, 4  ;;  %s1136_s13 = int_to_ptr.vmem [resolvable:$false] %s1135_s13 }
  0x35   : > { %s1137_s17 = scalar_lea.vmem %s1136_s13, 2048  ;;  %p1138_p10 = scmp.lt.s32.totalorder %s293_s7, %s1136_s13 }
  0x36   : > { %p1133_p9 = pnand %p1131_p8, %p1724_p7  ;;  %p1139_p13 = scmp.lt.s32.totalorder %s1137_s17, %s1130_s15 }
  0x37   : > { %s291_s8 = scalar_lea.hbm %s1747_s3, %s845_s20 }
  0x38   : > { %p1134_p12 = pneg %p1133_p9  ;;  %p1140_p0 = por %p1139_p13, %p1138_p10 }
  0x3a   : > { %p1141_p2 = pnand %p1140_p0, %p1134_p12 }
  0x3c   : > { %1144 = shalt.err (!%p1141_p2)
}
  0x3d   : > { %s1331_s19 = smov 128   ;;  %s1725_s20 = smov 64  }
  0x3e   : > { %s1726_s21 = smov 4   ;;  %s1515_s16 = sadd.s32 4294967295, %s1327_s11  }
  0x3f   : > { %962 = dma.hbm_to_vmem [thread:$0]  (!%p1485_p11), %s291_s8, 1024, %s293_s7, %s1490_s23, %s1331_s19, %s1725_s20, %s1726_s21  }
  0x40   : > { %s838_s12 = sadd.s32 4294967294, %s1327_s11   ;;  %p56_p3 = scmp.ne.s32.totalorder %s1303_s28, %s1299_s27 }
  0x41   : > { %p57_p4 = scmp.eq.s32.totalorder %s1515_s16, 0  ;;  %p124_p5 = scmp.ne.s32.totalorder %s1291_s25, %s1287_s24 }
  0x42   : > { %p221_p6 = scmp.eq.s32.totalorder %s1515_s16, 3  ;;  %p227_p9 = scmp.eq.s32.totalorder %s838_s12, 3 }
  0x43   : > { %p1526_p8 = por %p57_p4, %p56_p3  ;;  %p1532_p12 = por %p124_p5, %p57_p4 }
  0x44   : > { %p1539_p10 = por %p221_p6, %p50_p1  ;;  %p1543_p13 = por %p227_p9, %p56_p3 }
  0x45   : > { %s1749_s8 = scalar_select %p1532_p12, 1, 0 }
  0x46   : > { %s1750_s7 = scalar_select %p1539_p10, 1, 0 }
  0x47   : > { %s1751_s24 = scalar_select %p1543_p13, 1, 0 }
  0x48   : > { %p839_p0 = scmp.ge.s32.totalorder %s1327_s11, 1  ;;  %p234_p2 = scmp.lt.s32.totalorder %s1327_s11, 5 }
  0x49   : > { %s1334_s13 = smov [#allocation7]   ;;  %s881_s19 = sshll.u32 %s1319_s9, 10 }
  0x4a   : > { %p1549_p7 = pnand %p839_p0, %p234_p2  ;;  %s250_s17 = sshll.u32 %s1334_s13, 4  ;;  %s1559_s17 = int_to_ptr.vmem [resolvable:$true] %s250_s17 }
  0x4b   : > { %s318_s21 = scalar_lea.hbm %s1718_s5, %s881_s19  ;;  %s312_s0 = scalar_lea.vmem [#allocation10], %s1497_s18 }
  0x4c   : > { %p952_p1 = pneg %p1549_p7  ;;  %s319_s3 = sshll.u32 %s312_s0, 4  ;;  %s320_s3 = int_to_ptr.vmem [resolvable:$true] %s319_s3 }
  0x4d   : > { %s1158_s22 = scalar_lea.vmem %s320_s3, 1024  ;;  %p1754_p6 = pneg %p1485_p11 }
  0x4e   : > { %p1564_p3 = pnand %p952_p1, %p57_p4  ;;  %p1159_p5 = scmp.ne.s32.totalorder %s320_s3, %s1158_s22 }
  0x4f   : > { %s1335_s13 = smov [#allocation10]  }
  0x50   : > { %p1161_p9 = pnand %p1159_p5, %p1754_p6  ;;  %s1163_s9 = sshll.u32 %s1335_s13, 4  ;;  %s1164_s9 = int_to_ptr.vmem [resolvable:$false] %s1163_s9 }
  0x51   : > { %s1165_s20 = scalar_lea.vmem %s1164_s9, 2048  ;;  %p1166_p2 = scmp.lt.s32.totalorder %s320_s3, %s1164_s9 }
  0x52   : > { %p1162_p0 = pneg %p1161_p9  ;;  %p1167_p13 = scmp.lt.s32.totalorder %s1165_s20, %s1158_s22 }
  0x54   : > { %p1168_p10 = por %p1167_p13, %p1166_p2 }
  0x56   : > { %p1169_p12 = pnand %p1168_p10, %p1162_p0 }
  0x58   : > { %1172 = shalt.err (!%p1169_p12)
}
  0x59   : > { %s1755_s0 = smov 4   ;;  %s1756_s18 = smov 64  }
  0x5a   : > { %965 = dma.hbm_to_vmem [thread:$0]  (!%p1485_p11), %s318_s21, 1024, %s320_s3, %s1490_s23, %s1756_s18, %s1756_s18, %s1755_s0  }
  0x5b   : > { %p1175_p1 = pneg %p1564_p3  ;;  %s1184_s19 = scalar_lea.vmem %s1559_s17, 16 }
  0x5c   : > { %p1185_p5 = scmp.ne.s32.totalorder %s1559_s17, %s1184_s19  ;;  %s1191_s9 = scalar_lea.vmem %s1559_s17, 32 }
  0x5d   : > { %p1192_p12 = scmp.lt.s32.totalorder %s1559_s17, %s1559_s17  ;;  %p1193_p10 = scmp.lt.s32.totalorder %s1191_s9, %s1184_s19 }
  0x5e   : > { %p1187_p6 = pnand %p1185_p5, %p1175_p1 }
  0x5f   : > { %p1194_p9 = por %p1193_p10, %p1192_p12 }
  0x60   : > { %p1188_p13 = pneg %p1187_p6 }
  0x62   : > { %p1195_p0 = pnand %p1194_p9, %p1188_p13 }
  0x64   : > { %1198 = shalt.err (!%p1195_p0)
}
  0x65   : > { %955 = dma.hbm_to_vmem [thread:$0]  (!%p1564_p3), %s1715_s2, 16, %s1559_s17, [#allocation8]  }
  0x66   : > { %331 = sbr.rel (%p1549_p7) target bundleno = 914 (0x392), region = 48  ;;  %s333_s3 = sand.u32 (!%p1549_p7), 1, %s1515_s16  }
  0x67   : > { %s335_s23 = sand.u32 (!%p1549_p7), 1, %s1303_s28   ;;  %s334_s12 = scalar_lea.sflag (!%p1549_p7), [#allocation5], %s333_s3 }
  0x68   : > { %s1596_s21 = sshll.u32 (!%p1549_p7), %s335_s23, 3 }
  0x69   : > { %s337_s10 = scalar_lea.vmem (!%p1549_p7), [#allocation4], %s1596_s21 }
  0x6b   : > { %1270 = dma.done.wait (%p1526_p8), %s334_s12, 128  }
  0x6c   : > { %1272 = vsyncadd (%p1526_p8), %s334_s12, 4294967168 }
  0x6d   : > { %1274 = dma.done.wait (%p57_p4), [#allocation8], 16  }
  0x6e   : > { %1276 = vsyncadd (%p57_p4), [#allocation8], 4294967280  ;;  %s348_s6 = sand.u32 1, %s1291_s25   ;;  %p1757_p11 = scmp.ne.s32.totalorder %s1749_s8, 0 }
  0x6f   : > { %s852_s17 = sshll.u32 %s348_s6, 6 }
  0x70   : > { %s1608_s13 = scalar_lea.vmem [#allocation9], %s852_s17 }
  0x71   : > { %1278 = dma.done.wait (%p1757_p11), %s334_s12, 2048  }
  0x72   : > { %1280 = vsyncadd (%p1757_p11), %s334_s12, 4294965248  ;;  %p403_p7 = scmp.lt.s32.totalorder %s1311_s30, 1  ;;  %s1622_s18 = scalar_lea.vmem [#allocation10], %s852_s17 }
  0x73   : > { %s402_s19 = scalar_lea.vmem [#allocation11], %s1596_s21  ;;  %p855_p4 = scmp.ne.s32.totalorder %s1311_s30, 0 }
  0x74   : > { %s1616_s15 = scalar_select %p403_p7, %s1311_s30, 1 }
  0x75   : > { %411 = sbr.rel (%p855_p4) target bundleno = 432 (0x1b0), region = 68 }
  0x76   : > { %s405_s0 = scalar_lea.vmem %s1717_s4, %s1616_s15 }
  0x7a   : > { %v412_v0 = vld [vmem:[%s337_s10] sm:$0xff]  ;;  %v1336_v5 = vmov 0.0   ;;  %v856_v10 = vld [vmem:[%s1714_s1] ss:$0 sm:$0xff]  ;;  %v857_v12 = vld [vmem:[#allocation7] ss:$0 sm:$0xff] }
  0x7b   : > { %413 = vadd.xlane.f32.xlu0 %v412_v0  ;;  %443 = vst [vmem:[#allocation3] sm:$0xff] %v1336_v5 }
 0x104   : > { %v414_v1 = vpop.xlane.xlu0 %413 }
 0x105   : > { %v416_v2 = vmul.f32 0.0078125, %v414_v1 }
 0x107   : > { %v417_v3 = vsub.f32 %v412_v0, %v416_v2 }
 0x109   : > { %v418_v4 = vmul.f32 %v417_v3, %v417_v3 }
 0x10b   : > { %419 = vadd.xlane.f32.xlu0 %v418_v4 }
 0x194   : > { %v420_v6 = vpop.xlane.xlu0 %419 }
 0x195   : > { %v421_v7 = vmul.f32 0.0078125, %v420_v6 }
 0x197   : > { %v422_v8 = vadd.f32 1e-05, %v421_v7 }
 0x199   : > { %1069 = vrsqrt.f32 %v422_v8 }
 0x1a6   : > { %v1070_v9 = vpop.eup %1069 }
 0x1a7   : > { %v424_v11 = vmul.f32 %v1070_v9, %v417_v3 }
 0x1a9   : > { %v432_v13 = vmul.f32 %v856_v10, %v424_v11 }
 0x1ab   : > { %v440_v14 = vadd.f32 %v857_v12, %v432_v13 }
 0x1ad   : > { %v441_v15 = vpack.c.bf16 %v440_v14, %v440_v14 }
 0x1af   : > { %442 = vst [vmem:[#allocation2] sm:$0xf] %v441_v15 }
 0x1b0 PF: > { %v1071_v16 = vld [vmem:[%s1608_s13 + $0x38] sm:$0xff]   ;;  %v1337_v17 = vmov 0.0   ;;  %v1072_v18 = vld [vmem:[%s1608_s13 + $0x30] sm:$0xff]   ;;  %vm1338_vm0 = vmmov 0   ;;  %v1073_v19 = vld [vmem:[%s1608_s13 + $0x28] sm:$0xff]   ;;  %p875_p8 = scmp.ne.s32.totalorder %s1311_s30, 1 }
 0x1b1   : > { %900 = vmatprep.subr.bf16.mxu0 %v1337_v17  ;;  %920 = vmatprep.subr.bf16.mxu1 %v1337_v17  ;;  %v1079_v20 = vld [vmem:[%s1622_s18 + $0x38] sm:$0xff]   ;;  %v1074_v21 = vld [vmem:[%s1608_s13 + $0x20] sm:$0xff]   ;;  %v1080_v22 = vld [vmem:[%s1622_s18 + $0x30] sm:$0xff]   ;;  %s1758_s10 = sld [smem:[#allocation25_spill]] (!%p875_p8) }
 0x1b2   : > { %901 = vmatpush3.bf16.msra.mxu0 %v1071_v16  ;;  %916 = vmatprep.mubr.msk.bf16.mxu0 %vm1338_vm0, %v1337_v17  ;;  %v1075_v23 = vld [vmem:[%s1608_s13 + $0x18] sm:$0xff]   ;;  %v1076_v24 = vld [vmem:[%s1608_s13 + $0x10] sm:$0xff]   ;;  %v1077_v25 = vld [vmem:[%s1608_s13 + $0x8] sm:$0xff]  }
 0x1b3   : > { %902 = vmatprep.subr.bf16.mxu0 %v1337_v17  ;;  %936 = vmatprep.mubr.msk.bf16.mxu1 %vm1338_vm0, %v1337_v17  ;;  %v1078_v26 = vld [vmem:[%s1608_s13] sm:$0xff]   ;;  %v1081_v28 = vld [vmem:[%s1622_s18 + $0x28] sm:$0xff]   ;;  %v1083_v30 = vld [vmem:[%s1622_s18 + $0x18] sm:$0xff]  }
 0x1b4   : > { %921 = vmatpush3.bf16.msra.mxu1 %v1079_v20  ;;  %v1082_v29 = vld [vmem:[%s1622_s18 + $0x20] sm:$0xff]   ;;  %v1084_v31 = vld [vmem:[%s1622_s18 + $0x10] sm:$0xff]   ;;  %v1085_v32 = vld [vmem:[%s1622_s18 + $0x8] sm:$0xff]  }
 0x1b5   : > { %922 = vmatprep.subr.bf16.mxu1 %v1337_v17  ;;  %v1086_v33 = vld [vmem:[%s1622_s18] sm:$0xff]  }
 0x1b6   : > { %903 = vmatpush3.bf16.msra.mxu0 %v1072_v18  ;;  %v444_v27 = vld [vmem:[#allocation2] sm:$0xf]  ;;  %v561_v46 = vld [vmem:[#allocation3] sm:$0xff] }
 0x1b7   : > { %904 = vmatprep.subr.bf16.mxu0 %v1337_v17  ;;  %v858_v34 = vld [vmem:[%s405_s0] ss:$0 sm:$0xff] }
 0x1b8   : > { %923 = vmatpush3.bf16.msra.mxu1 %v1080_v22 }
 0x1b9   : > { %924 = vmatprep.subr.bf16.mxu1 %v1337_v17 }
 0x1ba   : > { %905 = vmatpush3.bf16.msra.mxu0 %v1073_v19 }
 0x1bb   : > { %906 = vmatprep.subr.bf16.mxu0 %v1337_v17 }
 0x1bc   : > { %925 = vmatpush3.bf16.msra.mxu1 %v1081_v28 }
 0x1bd   : > { %926 = vmatprep.subr.bf16.mxu1 %v1337_v17 }
 0x1be   : > { %907 = vmatpush3.bf16.msra.mxu0 %v1074_v21 }
 0x1bf   : > { %908 = vmatprep.subr.bf16.mxu0 %v1337_v17 }
 0x1c0   : > { %927 = vmatpush3.bf16.msra.mxu1 %v1082_v29 }
 0x1c1   : > { %928 = vmatprep.subr.bf16.mxu1 %v1337_v17 }
 0x1c2   : > { %909 = vmatpush3.bf16.msra.mxu0 %v1075_v23 }
 0x1c3   : > { %910 = vmatprep.subr.bf16.mxu0 %v1337_v17 }
 0x1c4   : > { %929 = vmatpush3.bf16.msra.mxu1 %v1083_v30 }
 0x1c5   : > { %930 = vmatprep.subr.bf16.mxu1 %v1337_v17 }
 0x1c6   : > { %911 = vmatpush3.bf16.msra.mxu0 %v1076_v24 }
 0x1c7   : > { %912 = vmatprep.subr.bf16.mxu0 %v1337_v17 }
 0x1c8   : > { %931 = vmatpush3.bf16.msra.mxu1 %v1084_v31 }
 0x1c9   : > { %932 = vmatprep.subr.bf16.mxu1 %v1337_v17 }
 0x1ca   : > { %913 = vmatpush3.bf16.msra.mxu0 %v1077_v25 }
 0x1cb   : > { %914 = vmatprep.subr.bf16.mxu0 %v1337_v17 }
 0x1cc   : > { %933 = vmatpush3.bf16.msra.mxu1 %v1085_v32 }
 0x1cd   : > { %934 = vmatprep.subr.bf16.mxu1 %v1337_v17 }
 0x1ce   : > { %915 = vmatpush3.bf16.msra.mxu0 %v1078_v26 }
 0x1d0   : > { %935 = vmatpush3.bf16.msra.mxu1 %v1086_v33 }
 0x1d1   : > { %917 = vmatmul.mubr.bf16.vlgmr.msra.gmra.mxu0 %v444_v27 }
 0x291   : > { %v550_v35 = vpop.f32.mrf.mxu0 }
 0x292   : > { %v551_v36 = vadd.f32 %v858_v34, %v550_v35 }
 0x293   : > { %v918_v37 = vpop.f32.mrf.mxu0 }
 0x294   : > { %v557_v38 = vmul.f32 0.70710677, %v551_v36  ;;  %v556_v42 = vmul.f32 0.5, %v551_v36 }
 0x295   : > { %v553_v39 = vpop.f32.mrf.mxu0 }
 0x296   : > { %1087 = verf.f32 %v557_v38 }
 0x297   : > { %v919_v40 = vpop.f32.mrf.mxu0 }
 0x2a3   : > { %v1088_v41 = vpop.eup %1087 }
 0x2a4   : > { %v559_v43 = vadd.f32 1.0, %v1088_v41 }
 0x2a6   : > { %v560_v44 = vmul.f32 %v559_v43, %v556_v42 }
 0x2a8   : > { %v562_v45 = vpack.c.bf16 %v560_v44, %v560_v44 }
 0x2aa   : > { %937 = vmatmul.mubr.bf16.vlgmr.msra.gmra.mxu1 %v562_v45 }
 0x36a   : > { %v661_v47 = vpop.f32.mrf.mxu1 }
 0x36b   : > { %v667_v48 = vadd.f32 %v661_v47, %v561_v46 }
 0x36c   : > { %v938_v49 = vpop.f32.mrf.mxu1  ;;  %672 = sbr.rel (%p875_p8) target bundleno = 888 (0x378), region = 72 }
 0x36d   : > { %668 = vst [vmem:[#allocation3] sm:$0xff] %v667_v48 }
 0x36e   : > { %v664_v50 = vpop.f32.mrf.mxu1 }
 0x370   : > { %v939_v51 = vpop.f32.mrf.mxu1 }
 0x371   : > { %v876_v53 = vld [vmem:[%s1758_s10] ss:$0 sm:$0xff] }
 0x374   : > { %v673_v52 = vld [vmem:[#allocation3] sm:$0xff] }
 0x375   : > { %v681_v54 = vadd.f32 %v876_v53, %v673_v52 }
 0x377   : > { %682 = vst [vmem:[%s402_s19] sm:$0xff] %v681_v54 }
 0x378 PF: > { %s1759_s6 = sld [smem:[#allocation16_spill]]  ;;  %s697_s20 = sshll.u32 %s402_s19, 4  ;;  %s698_s20 = int_to_ptr.vmem [resolvable:$true] %s697_s20 }
 0x379   : > { %s1760_s16 = sld [smem:[#allocation26_spill]]  ;;  %s684_s0 = scalar_lea.sflag [#allocation6], %s335_s23 }
 0x37a   : > { %s1199_s18 = scalar_lea.vmem %s698_s20, 128  ;;  %p1761_p2 = scmp.ne.s32.totalorder %s1750_s7, 0 }
 0x37b   : > { %p1200_p3 = scmp.ne.s32.totalorder %s698_s20, %s1199_s18  ;;  %s1339_s8 = smov [#allocation11]  }
 0x37c   : > { %s1203_s9 = sshll.u32 %s1339_s8, 4  ;;  %s1204_s9 = int_to_ptr.vmem [resolvable:$false] %s1203_s9 }
 0x37d   : > { %p1201_p1 = pnand %p1200_p3, %p1761_p2  ;;  %s1205_s22 = scalar_lea.vmem %s1204_s9, 256 }
 0x37e   : > { %s878_s17 = sshll.u32 %s1759_s6, 7  ;;  %p1206_p6 = scmp.lt.s32.totalorder %s698_s20, %s1204_s9 }
 0x37f   : > { %s695_s30 = scalar_lea.hbm %s1760_s16, %s878_s17  ;;  %p1202_p5 = pneg %p1201_p1 }
 0x380   : > { %p1207_p13 = scmp.lt.s32.totalorder %s1205_s22, %s1199_s18 }
 0x382   : > { %p1208_p12 = por %p1207_p13, %p1206_p6 }
 0x384   : > { %p1209_p10 = pnand %p1208_p12, %p1202_p5 }
 0x386   : > { %1212 = shalt.err (!%p1209_p10)
}
 0x387   : > { %s1213_s14 = scalar_lea.hbm %s695_s30, 128  ;;  %s1217_s19 = scalar_lea.hbm %s1760_s16, 256 }
 0x388   : > { %p1214_p9 = scmp.ne.s32.totalorder %s695_s30, %s1213_s14  ;;  %p1218_p7 = scmp.lt.s32.totalorder %s695_s30, %s1760_s16 }
 0x389   : > { %p1219_p4 = scmp.lt.s32.totalorder %s1217_s19, %s1213_s14 }
 0x38a   : > { %p1215_p0 = pnand %p1214_p9, %p1761_p2 }
 0x38b   : > { %p1220_p8 = por %p1219_p4, %p1218_p7 }
 0x38c   : > { %p1216_p11 = pneg %p1215_p0 }
 0x38e   : > { %p1221_p3 = pnand %p1220_p8, %p1216_p11 }
 0x390   : > { %1224 = shalt.err (!%p1221_p3)
}
 0x391   : > { %950 = dma.vmem_to_hbm [thread:$0]  (%p1761_p2), %s698_s20, 128, %s695_s30, %s684_s0  }
 0x392 PF: > { %p973_p1 = scmp.ge.s32.totalorder %s1327_s11, 2  ;;  %s709_s10 = sand.u32 1, %s1299_s27  }
 0x393   : > { %p1762_p5 = scmp.ne.s32.totalorder %s1751_s24, 0  ;;  %s710_s6 = scalar_lea.sflag [#allocation6], %s709_s10 }
 0x395   : > { %p967_p6 = pnand %p973_p1, %p1762_p5 }
 0x397   : > { %p968_p13 = pneg %p967_p6 }
 0x399   : > { %1282 = dma.done.wait (%p968_p13), %s710_s6, 128  }
 0x39a   : > { %1284 = vsyncadd (%p968_p13), %s710_s6, 4294967168  ;;  %s24_s11 = sadd.s32 1, %s1327_s11   ;;  %s1763_s17 = sld [smem:[#allocation21_spill]] }
 0x39b   : > { %p21_p12 = scmp.ge.s32.totalorder %s24_s11, 6   ;;  %s1764_s7 = sld [smem:[#allocation22_spill]] }
 0x39c   : > { %s1765_s30 = sld [smem:[#allocation17_spill]]  ;;  %s1769_s24 = smov %s1291_s25 }
 0x39d   : > { %s1766_s8 = sld [smem:[#allocation18_spill]]  ;;  %s1770_s25 = smov %s1295_s26 }
 0x39e   : > { %s1767_s9 = sld [smem:[#allocation19_spill]]  ;;  %s1772_s27 = smov %s1303_s28 }
 0x39f   : > { %s1768_s10 = sld [smem:[#allocation20_spill]]  ;;  %s1773_s28 = smov %s1307_s29 }
 0x3a0   : > { %s1771_s26 = smov %s1763_s17  ;;  %23 = sbr.rel (!%p21_p12) target bundleno = 15 (0xf), region = 130 }
 0x3a1   : > { %s1774_s29 = smov %s1764_s7 }
 0x3a5   :  { %715 = vsyncpa [#allocation5], 1 }
 0x3a6   :  { %717 = vsyncpa [#allocation5 + $0x1], 1 }
 0x3a7   :  { %718 = vsyncpa [#allocation8], 1 }
 0x3a8   :  { %719 = vsyncpa [#allocation6], 1 }
 0x3a9   :  { %721 = vsyncpa [#allocation6 + $0x1], 1 }

</bundles_post_ra>
